<compile_context>
chip_gen: v7x
topology: tpu7x:2x2x1
jax: 0.10.0
libtpu: 0.0.40
codegen_flags: <defaults>
</compile_context>

<pallas_src>
import functools
import math

import numpy as np
import jax
import jax.numpy as jnp
from jax.experimental import pallas as pl
from jax.experimental.pallas import tpu as pltpu


# ---------------------------------------------------------------------------
# sincos position embeddings (host-side numpy, same math as the PyTorch module)
# ---------------------------------------------------------------------------
def get_1d_sincos_pos_embed_from_grid(embed_dim, pos):
    assert embed_dim % 2 == 0
    omega = np.arange(embed_dim // 2, dtype=np.float32)
    omega /= embed_dim / 2.0
    omega = 1.0 / 10000 ** omega
    pos = pos.reshape(-1)
    out = np.einsum('m,d->md', pos, omega)
    emb_sin = np.sin(out)
    emb_cos = np.cos(out)
    return np.concatenate([emb_sin, emb_cos], axis=1)


def get_2d_sincos_pos_embed_from_grid(embed_dim, grid):
    assert embed_dim % 2 == 0
    emb_h = get_1d_sincos_pos_embed_from_grid(embed_dim // 2, grid[0])
    emb_w = get_1d_sincos_pos_embed_from_grid(embed_dim // 2, grid[1])
    return np.concatenate([emb_h, emb_w], axis=1)


def get_2d_sincos_pos_embed(embed_dim, grid_size, cls_token=False):
    grid_h = np.arange(grid_size, dtype=np.float32)
    grid_w = np.arange(grid_size, dtype=np.float32)
    grid = np.meshgrid(grid_w, grid_h)
    grid = np.stack(grid, axis=0)
    grid = grid.reshape([2, 1, grid_size, grid_size])
    pos_embed = get_2d_sincos_pos_embed_from_grid(embed_dim, grid)
    if cls_token:
        pos_embed = np.concatenate([np.zeros([1, embed_dim]), pos_embed], axis=0)
    return pos_embed


# ---------------------------------------------------------------------------
# Pallas kernels
# ---------------------------------------------------------------------------
def _kv_proj_kernel(x_ref, pos_ref, wk_ref, bk_ref, wv_ref, bv_ref, k_ref, v_ref):
    """One encoder tile feeds both the K and V matmuls (shared DMA).

    x_ref:   [1, ts, H] (compute dtype)      pos_ref: [ts, H] f32
    wk_ref/wv_ref: [H, H] resident weights   bk_ref/bv_ref: [1, H] f32
    k_ref/v_ref:   [1, ts, H] outputs (lane-dense, H % 128 == 0)
    """
    xv = x_ref[0]                                                 # [ts, H]
    # pos add in f32 (accuracy), matmul operands in compute dtype
    xk = (xv.astype(jnp.float32) + pos_ref[...]).astype(xv.dtype)
    k = jnp.dot(xk, wk_ref[...], preferred_element_type=jnp.float32) + bk_ref[...]
    v = jnp.dot(xv, wv_ref[...], preferred_element_type=jnp.float32) + bv_ref[...]
    k_ref[0] = k.astype(k_ref.dtype)
    v_ref[0] = v.astype(v_ref.dtype)


def _fused_attention_kernel(hid_ref, qpos_ref, wq_ref, bq_ref, k_ref, v_ref,
                            o_ref, *, num_heads, head_dim, scale,
                            valid_len, padded_len, approx_recip):
    """Fused Q projection + multi-head attention for one batch element.

    hid_ref: [1, Nq, H]   qpos_ref: [Nq, H] f32
    wq_ref:  [H, H] (resident)   bq_ref: [1, H] f32
    k_ref/v_ref: [1, Sp, H] (compute dtype, token-major layout)
    o_ref:   [1, Nq, H] lane-dense merged context
    """
    cdt = k_ref.dtype

    # ---- fused query projection (pos add in f32, 1/sqrt(d) folded into q) --
    x = hid_ref[0].astype(jnp.float32) + qpos_ref[...]            # [Nq, H] f32
    q = jnp.dot(x.astype(cdt), wq_ref[...],
                preferred_element_type=jnp.float32)
    q = ((q + bq_ref[...]) * scale).astype(cdt)                   # [Nq, H]

    k = k_ref[0]                                                  # [Sp, H]
    v = v_ref[0]

    # Additive key-padding mask, computed once (only when S was padded).
    if padded_len != valid_len:
        kidx = jax.lax.broadcasted_iota(jnp.int32, (1, padded_len), 1)
        mask_bias = jnp.where(kidx < valid_len,
                              jnp.float32(0.0), jnp.float32(-1e30))
    else:
        mask_bias = None

    nt_dims = (((1,), (1,)), ((), ()))   # contract head_dim of q_h and k_h

    # Static per-head loop: only one [Nq, Sp] f32 score tensor live at a time,
    # head slices are static lane slices, output writes build the merged
    # [Nq, H] context in place (lane-dense HBM writeback of the whole block).
    for h in range(num_heads):
        sl = slice(h * head_dim, (h + 1) * head_dim)
        q_h = q[:, sl]                                            # [Nq, d]
        k_h = k[:, sl]                                            # [Sp, d]
        v_h = v[:, sl]                                            # [Sp, d]

        s = jax.lax.dot_general(q_h, k_h, nt_dims,
                                preferred_element_type=jnp.float32)  # [Nq, Sp]
        if mask_bias is not None:
            s = s + mask_bias

        # numerically-stable softmax, normalization deferred past PV matmul
        m = jnp.max(s, axis=-1, keepdims=True)
        e = jnp.exp(s - m)
        l = jnp.sum(e, axis=-1, keepdims=True)                    # [Nq, 1]
        ctx = jnp.dot(e.astype(cdt), v_h,
                      preferred_element_type=jnp.float32)         # [Nq, d]
        ctx = ctx * pl.reciprocal(l, approx=approx_recip)
        o_ref[0, :, sl] = ctx.astype(o_ref.dtype)


# ---------------------------------------------------------------------------
# helpers
# ---------------------------------------------------------------------------
def _round_up(n, m):
    return ((n + m - 1) // m) * m


def _pad_axis(x, axis, target):
    pad = target - x.shape[axis]
    if pad <= 0:
        return x
    widths = [(0, 0)] * x.ndim
    widths[axis] = (0, pad)
    return jnp.pad(x, widths)


def _default_token_tile():
    """Generation-aware encoder token tile: 512 on 128-MiB-VMEM chips
    (v5e/v6e), 256 otherwise (v7x has 64 MiB per TensorCore)."""
    try:
        info = pltpu.get_tpu_info()
        vmem = getattr(info, "vmem_capacity_bytes", None)
        if vmem is not None and vmem >= 96 * 1024 * 1024:
            return 512
    except Exception:
        pass
    return 256


def _adjust_k_pos_embed(k_pos_embed, seq_len, num_queries):
    """Replicates the length-adjustment logic of the PyTorch forward."""
    kp = k_pos_embed
    if seq_len != kp.shape[0]:
        if seq_len > kp.shape[0]:
            rep = (seq_len + kp.shape[0] - 1) // kp.shape[0]
            kp = jnp.tile(kp, (rep, 1))[:seq_len]
        else:
            kp = kp[:seq_len]
    if num_queries + kp.shape[0] != seq_len:
        target = seq_len - num_queries
        if target > kp.shape[0]:
            rep = (target + kp.shape[0] - 1) // kp.shape[0]
            kp = jnp.tile(kp, (rep, 1))[:target]
        else:
            kp = kp[:target]
    return kp


# ---------------------------------------------------------------------------
# wrapper
# ---------------------------------------------------------------------------
def mplug_owl_visual_abstractor_mha(
        hidden_states,           # [B, Nq, H]  learnable queries
        encoder_hidden_states,   # [B, S,  H]  encoder tokens (E == H required)
        q_pos_embed,             # [Nq, H]
        k_pos_embed,             # [1 + grid^2, H]
        wq, bq,                  # nn.Linear(H, H) params: w [out, in], b [out]
        wk, bk,
        wv, bv,
        num_heads,
        *,
        encoder_attention_mask=None,
        head_mask=None,
        token_tile=None,                 # None -> generation-aware default
        compute_dtype=jnp.bfloat16,      # production MXU path; f32 = debug
        vmem_limit_bytes=None):          # optional scoped-VMEM cap (v5e: raise
                                         # above the 16 MiB default for big H)
    # TODO(synk): additive attention/head masks not implemented in the kernel.
    assert encoder_attention_mask is None, "encoder_attention_mask unsupported"
    assert head_mask is None, "head_mask unsupported"

    B, Nq, H = hidden_states.shape
    Bk, S, E = encoder_hidden_states.shape
    assert Bk == B and E == H and H % num_heads == 0
    assert H % 128 == 0, "hidden_size must be a multiple of 128 (lane-dense)"
    d = H // num_heads
    out_dtype = hidden_states.dtype
    cdt = compute_dtype if compute_dtype is not None else out_dtype
    if token_tile is None:
        token_tile = _default_token_tile()

    # --- position embeddings (module's length-adjustment logic), kept f32 --
    q_pos = q_pos_embed.astype(jnp.float32)
    kp = _adjust_k_pos_embed(k_pos_embed.astype(jnp.float32), S, Nq)
    qk_pos = jnp.concatenate([q_pos, kp], axis=0)
    assert qk_pos.shape[0] == S, (
        f"Position embedding size {qk_pos.shape[0]} does not match encoder "
        f"hidden states size {S}")

    # --- operands in compute dtype; biases / pos embeds stay f32 -----------
    hid_c = hidden_states.astype(cdt)
    enc_c = encoder_hidden_states.astype(cdt)
    wq_t = wq.T.astype(cdt)
    wk_t = wk.T.astype(cdt)
    wv_t = wv.T.astype(cdt)
    bq_r = bq.astype(jnp.float32).reshape(1, H)
    bk_r = bk.astype(jnp.float32).reshape(1, H)
    bv_r = bv.astype(jnp.float32).reshape(1, H)

    # --- encoder token tiling: no padding when S fits one tile -------------
    if S <= token_tile:
        ts, Sp = S, S                     # block == full dim, no padding
    else:
        ts = token_tile
        assert ts % 8 == 0, "token_tile must be a multiple of 8"
        Sp = _round_up(S, ts)
    enc_p = _pad_axis(enc_c, 1, Sp)
    qkpos_p = _pad_axis(qk_pos, 0, Sp)

    compiler_kw = {}
    if vmem_limit_bytes is not None:
        compiler_kw["vmem_limit_bytes"] = vmem_limit_bytes

    # --- key/value projections (shared encoder tile, resident weights) -----
    k_proj, v_proj = pl.pallas_call(
        _kv_proj_kernel,
        out_shape=(jax.ShapeDtypeStruct((B, Sp, H), cdt),
                   jax.ShapeDtypeStruct((B, Sp, H), cdt)),
        grid_spec=pltpu.PrefetchScalarGridSpec(
            num_scalar_prefetch=0,
            grid=(B, Sp // ts),
            in_specs=[
                pl.BlockSpec((1, ts, H), lambda b, t: (b, t, 0)),
                pl.BlockSpec((ts, H), lambda b, t: (t, 0)),
                pl.BlockSpec((H, H), lambda b, t: (0, 0)),   # resident Wk
                pl.BlockSpec((1, H), lambda b, t: (0, 0)),
                pl.BlockSpec((H, H), lambda b, t: (0, 0)),   # resident Wv
                pl.BlockSpec((1, H), lambda b, t: (0, 0)),
            ],
            out_specs=[
                pl.BlockSpec((1, ts, H), lambda b, t: (b, t, 0)),
                pl.BlockSpec((1, ts, H), lambda b, t: (b, t, 0)),
            ],
        ),
        compiler_params=pltpu.CompilerParams(
            dimension_semantics=("parallel", "parallel"), **compiler_kw),
    )(enc_p, qkpos_p, wk_t, bk_r, wv_t, bv_r)

    # --- fused Q projection + attention, lane-dense [B, Nq, H] output ------
    scale = 1.0 / math.sqrt(d)
    approx_recip = np.dtype(cdt) != np.dtype(jnp.float32)
    context = pl.pallas_call(
        functools.partial(_fused_attention_kernel,
                          num_heads=num_heads, head_dim=d, scale=scale,
                          valid_len=S, padded_len=Sp,
                          approx_recip=approx_recip),
        out_shape=jax.ShapeDtypeStruct((B, Nq, H), out_dtype),
        grid_spec=pltpu.PrefetchScalarGridSpec(
            num_scalar_prefetch=0,
            grid=(B,),
            in_specs=[
                pl.BlockSpec((1, Nq, H), lambda b: (b, 0, 0)),
                pl.BlockSpec((Nq, H), lambda b: (0, 0)),
                pl.BlockSpec((H, H), lambda b: (0, 0)),      # resident Wq
                pl.BlockSpec((1, H), lambda b: (0, 0)),
                pl.BlockSpec((1, Sp, H), lambda b: (b, 0, 0)),
                pl.BlockSpec((1, Sp, H), lambda b: (b, 0, 0)),
            ],
            out_specs=pl.BlockSpec((1, Nq, H), lambda b: (b, 0, 0)),
        ),
        compiler_params=pltpu.CompilerParams(
            dimension_semantics=("parallel",), **compiler_kw),
    )(hid_c, q_pos, wq_t, bq_r, k_proj, v_proj)

    # --- past_key_value in the module's [B, nh, S, d] layout ---------------
    # (Off the attention hot path; produced only because the module's API
    #  returns key_layer/value_layer in head-split layout.)
    k_cache = k_proj[:, :S].reshape(B, S, num_heads, d).transpose(0, 2, 1, 3)
    v_cache = v_proj[:, :S].reshape(B, S, num_heads, d).transpose(0, 2, 1, 3)
    return context, (k_cache, v_cache)


# ---------------------------------------------------------------------------
# pure-JAX reference (same math as the PyTorch forward)
# ---------------------------------------------------------------------------
def _reference_forward(hidden, enc, q_pos, k_pos, wq, bq, wk, bk, wv, bv, nh):
    B, Nq, H = hidden.shape
    _, S, _ = enc.shape
    d = H // nh
    hp = jax.lax.Precision.HIGHEST
    kp = _adjust_k_pos_embed(k_pos, S, Nq)
    qk_pos = jnp.concatenate([q_pos, kp], axis=0)[None]          # [1, S, H]

    key = jnp.einsum('bsh,oh->bso', enc + qk_pos, wk, precision=hp) + bk
    val = jnp.einsum('bsh,oh->bso', enc, wv, precision=hp) + bv
    qry = jnp.einsum('bqh,oh->bqo', hidden + q_pos[None], wq, precision=hp) + bq

    def split(x):
        return x.reshape(x.shape[0], x.shape[1], nh, d).transpose(0, 2, 1, 3)

    qh, kh, vh = split(qry), split(key), split(val)
    scores = jnp.einsum('bhqd,bhkd->bhqk', qh, kh, precision=hp) / math.sqrt(d)
    probs = jax.nn.softmax(scores, axis=-1)
    ctx = jnp.einsum('bhqk,bhkd->bhqd', probs, vh, precision=hp)
    ctx = ctx.transpose(0, 2, 1, 3).reshape(B, Nq, H)
    return ctx, (kh, vh)


# ---------------------------------------------------------------------------
if __name__ == "__main__":
    # Small config consistent with the module; hidden_size a multiple of 128
    # so every output last-dim is lane-dense.
    B = 2
    hidden_size = 128
    num_heads = 4                              # head_dim = 32
    num_learnable_queries = 8
    grid_size = 4                              # k_pos: 1 + 16 = 17 rows (cls)
    enc_seq = num_learnable_queries + 1 + grid_size * grid_size   # 25

    key = jax.random.PRNGKey(0)
    ks = jax.random.split(key, 8)
    hidden = jax.random.normal(ks[0], (B, num_learnable_queries, hidden_size),
                               dtype=jnp.float32)
    enc = jax.random.normal(ks[1], (B, enc_seq, hidden_size), dtype=jnp.float32)
    # nn.Linear weights are (out_features, in_features)
    wq = jax.random.normal(ks[2], (hidden_size, hidden_size), jnp.float32) * 0.02
    bq = jax.random.normal(ks[3], (hidden_size,), jnp.float32) * 0.02
    wk = jax.random.normal(ks[4], (hidden_size, hidden_size), jnp.float32) * 0.02
    bk = jax.random.normal(ks[5], (hidden_size,), jnp.float32) * 0.02
    wv = jax.random.normal(ks[6], (hidden_size, hidden_size), jnp.float32) * 0.02
    bv = jax.random.normal(ks[7], (hidden_size,), jnp.float32) * 0.02

    q_pos = jnp.asarray(
        get_1d_sincos_pos_embed_from_grid(
            hidden_size, np.arange(num_learnable_queries, dtype=np.float32)),
        dtype=jnp.float32)
    k_pos = jnp.asarray(
        get_2d_sincos_pos_embed(hidden_size, grid_size, cls_token=True),
        dtype=jnp.float32)

    ref_ctx, (ref_k, ref_v) = _reference_forward(
        hidden, enc, q_pos, k_pos, wq, bq, wk, bk, wv, bv, num_heads)

    # --- default bf16 production path --------------------------------------
    ctx, (k_layer, v_layer) = mplug_owl_visual_abstractor_mha(
        hidden, enc, q_pos, k_pos, wq, bq, wk, bk, wv, bv, num_heads)
    jax.block_until_ready(ctx)
    assert jnp.allclose(ctx, ref_ctx, atol=5e-2, rtol=5e-2), "bf16 context mismatch"
    assert jnp.allclose(k_layer, ref_k, atol=5e-2, rtol=5e-2), "bf16 key mismatch"
    assert jnp.allclose(v_layer, ref_v, atol=5e-2, rtol=5e-2), "bf16 value mismatch"

    # --- f32 debug path -----------------------------------------------------
    ctx32, (k32, v32) = mplug_owl_visual_abstractor_mha(
        hidden, enc, q_pos, k_pos, wq, bq, wk, bk, wv, bv, num_heads,
        compute_dtype=jnp.float32)
    jax.block_until_ready(ctx32)
    assert jnp.allclose(ctx32, ref_ctx, atol=1e-2, rtol=1e-2), "f32 context mismatch"
    assert jnp.allclose(k32, ref_k, atol=1e-2, rtol=1e-2), "f32 key mismatch"
    assert jnp.allclose(v32, ref_v, atol=1e-2, rtol=1e-2), "f32 value mismatch"

    # --- tiled-encoder path (token_tile < S exercises padding + key mask) --
    ctx_t, _ = mplug_owl_visual_abstractor_mha(
        hidden, enc, q_pos, k_pos, wq, bq, wk, bk, wv, bv, num_heads,
        token_tile=16)
    jax.block_until_ready(ctx_t)
    assert jnp.allclose(ctx_t, ref_ctx, atol=5e-2, rtol=5e-2), "tiled path mismatch"

    print("KERNEL_OK")
</pallas_src>

<mosaic_0001>
module attributes {stable_mosaic.version = 11 : i64} {
  func.func @_kv_proj_kernel(%arg0: i32, %arg1: i32, %arg2: memref<1x25x128xbf16, #tpu.memory_space<vmem>>, %arg3: memref<25x128xf32, #tpu.memory_space<vmem>>, %arg4: memref<128x128xbf16, #tpu.memory_space<vmem>>, %arg5: memref<1x128xf32, #tpu.memory_space<vmem>>, %arg6: memref<128x128xbf16, #tpu.memory_space<vmem>>, %arg7: memref<1x128xf32, #tpu.memory_space<vmem>>, %arg8: memref<1x25x128xbf16, #tpu.memory_space<vmem>>, %arg9: memref<1x25x128xbf16, #tpu.memory_space<vmem>>) attributes {dimension_semantics = [#tpu.dimension_semantics<parallel>, #tpu.dimension_semantics<parallel>], iteration_bounds = array<i64: 2, 1>, scalar_prefetch = 0 : i64, scratch_operands = 0 : i64, tpu.core_type = #tpu.core_type<tc>, window_params = [{transform_indices = @transform_0, window_bounds = array<i64: 1, 25, 128>}, {transform_indices = @transform_1, window_bounds = array<i64: 25, 128>}, {pipeline_mode = #tpu.pipeline_mode<synchronous>, transform_indices = @transform_2, window_bounds = array<i64: 128, 128>}, {pipeline_mode = #tpu.pipeline_mode<synchronous>, transform_indices = @transform_3, window_bounds = array<i64: 1, 128>}, {pipeline_mode = #tpu.pipeline_mode<synchronous>, transform_indices = @transform_4, window_bounds = array<i64: 128, 128>}, {pipeline_mode = #tpu.pipeline_mode<synchronous>, transform_indices = @transform_5, window_bounds = array<i64: 1, 128>}, {transform_indices = @transform_6, window_bounds = array<i64: 1, 25, 128>}, {transform_indices = @transform_7, window_bounds = array<i64: 1, 25, 128>}]} {
    %c0 = arith.constant 0 : index
    %c0_0 = arith.constant 0 : index
    %c0_1 = arith.constant 0 : index
    %0 = vector.load %arg2[%c0, %c0_0, %c0_1] : memref<1x25x128xbf16, #tpu.memory_space<vmem>>, vector<1x25x128xbf16>
    %1 = vector.shape_cast %0 : vector<1x25x128xbf16> to vector<25x128xbf16>
    %2 = arith.extf %1 : vector<25x128xbf16> to vector<25x128xf32>
    %c0_2 = arith.constant 0 : index
    %c0_3 = arith.constant 0 : index
    %3 = vector.load %arg3[%c0_2, %c0_3] : memref<25x128xf32, #tpu.memory_space<vmem>>, vector<25x128xf32>
    %4 = arith.addf %2, %3 : vector<25x128xf32>
    %5 = arith.truncf %4 : vector<25x128xf32> to vector<25x128xbf16>
    %c0_4 = arith.constant 0 : index
    %c0_5 = arith.constant 0 : index
    %6 = vector.load %arg4[%c0_4, %c0_5] : memref<128x128xbf16, #tpu.memory_space<vmem>>, vector<128x128xbf16>
    %cst = arith.constant dense<0.000000e+00> : vector<25x128xf32>
    %7 = tpu.matmul %5, %6, %cst {dimension_numbers = #tpu.dot_dimension_numbers<[1], [0], [0], [1], [0, 0, 1, 1], [], []>} : vector<25x128xbf16>, vector<128x128xbf16>, vector<25x128xf32> -> vector<25x128xf32>
    %c0_6 = arith.constant 0 : index
    %c0_7 = arith.constant 0 : index
    %8 = vector.load %arg5[%c0_6, %c0_7] : memref<1x128xf32, #tpu.memory_space<vmem>>, vector<1x128xf32>
    %9 = vector.broadcast %8 : vector<1x128xf32> to vector<25x128xf32>
    %10 = arith.addf %7, %9 : vector<25x128xf32>
    %c0_8 = arith.constant 0 : index
    %c0_9 = arith.constant 0 : index
    %11 = vector.load %arg6[%c0_8, %c0_9] : memref<128x128xbf16, #tpu.memory_space<vmem>>, vector<128x128xbf16>
    %cst_10 = arith.constant dense<0.000000e+00> : vector<25x128xf32>
    %12 = tpu.matmul %1, %11, %cst_10 {dimension_numbers = #tpu.dot_dimension_numbers<[1], [0], [0], [1], [0, 0, 1, 1], [], []>} : vector<25x128xbf16>, vector<128x128xbf16>, vector<25x128xf32> -> vector<25x128xf32>
    %c0_11 = arith.constant 0 : index
    %c0_12 = arith.constant 0 : index
    %13 = vector.load %arg7[%c0_11, %c0_12] : memref<1x128xf32, #tpu.memory_space<vmem>>, vector<1x128xf32>
    %14 = vector.broadcast %13 : vector<1x128xf32> to vector<25x128xf32>
    %15 = arith.addf %12, %14 : vector<25x128xf32>
    %16 = arith.truncf %10 : vector<25x128xf32> to vector<25x128xbf16>
    %c0_13 = arith.constant 0 : index
    %c0_14 = arith.constant 0 : index
    %c0_15 = arith.constant 0 : index
    %17 = vector.load %arg8[%c0_13, %c0_14, %c0_15] : memref<1x25x128xbf16, #tpu.memory_space<vmem>>, vector<1x25x128xbf16>
    %18 = vector.shape_cast %17 : vector<1x25x128xbf16> to vector<25x128xbf16>
    %19 = vector.shape_cast %16 : vector<25x128xbf16> to vector<1x25x128xbf16>
    tpu.vector_store %arg8[%c0_13, %c0_14, %c0_15], %19 {strides = array<i32>} : memref<1x25x128xbf16, #tpu.memory_space<vmem>>, vector<1x25x128xbf16>,
    %20 = arith.truncf %15 : vector<25x128xf32> to vector<25x128xbf16>
    %c0_16 = arith.constant 0 : index
    %c0_17 = arith.constant 0 : index
    %c0_18 = arith.constant 0 : index
    %21 = vector.load %arg9[%c0_16, %c0_17, %c0_18] : memref<1x25x128xbf16, #tpu.memory_space<vmem>>, vector<1x25x128xbf16>
    %22 = vector.shape_cast %21 : vector<1x25x128xbf16> to vector<25x128xbf16>
    %23 = vector.shape_cast %20 : vector<25x128xbf16> to vector<1x25x128xbf16>
    tpu.vector_store %arg9[%c0_16, %c0_17, %c0_18], %23 {strides = array<i32>} : memref<1x25x128xbf16, #tpu.memory_space<vmem>>, vector<1x25x128xbf16>,
    return
  }
  func.func @transform_0(%arg0: i32, %arg1: i32) -> (i32, i32, i32) {
    %c0_i32 = arith.constant 0 : i32
    %c0_i32_0 = arith.constant 0 : i32
    return %arg0, %arg1, %c0_i32 : i32, i32, i32
  }
  func.func @transform_1(%arg0: i32, %arg1: i32) -> (i32, i32) {
    %c0_i32 = arith.constant 0 : i32
    %c0_i32_0 = arith.constant 0 : i32
    return %arg1, %c0_i32 : i32, i32
  }
  func.func @transform_2(%arg0: i32, %arg1: i32) -> (i32, i32) {
    %c0_i32 = arith.constant 0 : i32
    %c0_i32_0 = arith.constant 0 : i32
    %c0_i32_1 = arith.constant 0 : i32
    return %c0_i32, %c0_i32_0 : i32, i32
  }
  func.func @transform_3(%arg0: i32, %arg1: i32) -> (i32, i32) {
    %c0_i32 = arith.constant 0 : i32
    %c0_i32_0 = arith.constant 0 : i32
    %c0_i32_1 = arith.constant 0 : i32
    return %c0_i32, %c0_i32_0 : i32, i32
  }
  func.func @transform_4(%arg0: i32, %arg1: i32) -> (i32, i32) {
    %c0_i32 = arith.constant 0 : i32
    %c0_i32_0 = arith.constant 0 : i32
    %c0_i32_1 = arith.constant 0 : i32
    return %c0_i32, %c0_i32_0 : i32, i32
  }
  func.func @transform_5(%arg0: i32, %arg1: i32) -> (i32, i32) {
    %c0_i32 = arith.constant 0 : i32
    %c0_i32_0 = arith.constant 0 : i32
    %c0_i32_1 = arith.constant 0 : i32
    return %c0_i32, %c0_i32_0 : i32, i32
  }
  func.func @transform_6(%arg0: i32, %arg1: i32) -> (i32, i32, i32) {
    %c0_i32 = arith.constant 0 : i32
    %c0_i32_0 = arith.constant 0 : i32
    return %arg0, %arg1, %c0_i32 : i32, i32, i32
  }
  func.func @transform_7(%arg0: i32, %arg1: i32) -> (i32, i32, i32) {
    %c0_i32 = arith.constant 0 : i32
    %c0_i32_0 = arith.constant 0 : i32
    return %arg0, %arg1, %c0_i32 : i32, i32, i32
  }
}

</mosaic_0001>

<bundles_post_ra>
// kernel: tpu_custom_call.1
= control target key start
LH: loop header
LB: loop body
LE: loop exit
PB: predicated region body
PF: predicated region fallthrough
CT: control target
= control target key end

     0   :  { %13 = vsyncpa [#allocation3], 0  ;;  %s1353_s0 = inlined_call_operand.vmem [shape: bf16[2,25,128], index: 0, kind: input, shape index: {}]   ;;  %s1354_s1 = inlined_call_operand.hbm [shape: f32[25,128], index: 1, kind: input, shape index: {}]   ;;  %s1355_s2 = inlined_call_operand.vmem [shape: bf16[128,128], index: 2, kind: input, shape index: {}]   ;;  %s1356_s3 = inlined_call_operand.vmem [shape: f32[1,128], index: 3, kind: input, shape index: {}]   ;;  %s1357_s4 = inlined_call_operand.hbm [shape: bf16[128,128], index: 4, kind: input, shape index: {}]   ;;  %s1358_s5 = inlined_call_operand.vmem [shape: f32[1,128], index: 5, kind: input, shape index: {}]   ;;  %s1359_s6 = inlined_call_operand.vmem [shape: bf16[2,25,128], index: 6, kind: output, shape index: {0}]   ;;  %s1360_s7 = inlined_call_operand.vmem [shape: bf16[2,25,128], index: 7, kind: output, shape index: {1}]  }
   0x1   :  { %14 = vsyncpa [#allocation5], 0  ;;  %s1188_s24 = smov 0   ;;  %s1190_s25 = smov 0  }
   0x2   :  { %s1192_s26 = smov 0  }
   0x3 LB: > { %s860_s27 = sadd.s32 4294967295, %s1140_s26   ;;  %s32_s28 = sadd.s32 1, %s1136_s25  ;;  %s1140_s26 = sphi %s1192_s26, %s20_s26   ;;  %s1136_s25 = sphi %s1190_s25, %s1372_s25   ;;  %s1132_s24 = sphi %s1188_s24, %s1371_s24  }
   0x4   : > { %p34_p0 = scmp.ge.s32.totalorder %s32_s28, 2  ;;  %p862_p1 = scmp.ge.s32.totalorder %s1140_s26, 1 }
   0x5   : > { %p231_p2 = scmp.lt.s32.totalorder %s1140_s26, 3  ;;  %p1213_p4 = scmp.eq.s32.totalorder %s860_s27, 0 }
   0x6   : > { %s1374_s28 = smov (%p34_p0, %s32_s28), 0  ;;  %s1142_s8 = smov [#allocation2]  }
   0x7   : > { %p1209_p3 = pnand %p862_p1, %p231_p2  ;;  %s246_s9 = sshll.u32 %s1142_s8, 4  ;;  %s247_s9 = int_to_ptr.vmem [resolvable:$true] %s246_s9 }
   0x8   : > { %s1365_s30 = scalar_select %p1213_p4, 1, 0 }
   0x9   : > { %s1364_s29 = scalar_select %p1209_p3, 1, 0 }
   0xa   : > { %p994_p5 = pneg %p1209_p3  ;;  %s1143_s11 = smov [#allocation4]  }
   0xb   : > { %s265_s12 = sshll.u32 %s1143_s11, 4  ;;  %s1054_s15 = scalar_lea.hbm %s1354_s1, 512  ;;  %s1225_s12 = int_to_ptr.vmem [resolvable:$true] %s265_s12 }
   0xc   : > { %p1221_p6 = pnand %p1213_p4, %p994_p5  ;;  %p1055_p7 = scmp.ne.s32.totalorder %s1354_s1, %s1054_s15 }
   0xd   : > { %p1061_p11 = scmp.lt.u32.totalorder %s1054_s15, %s1354_s1 }
   0xe   : > { %p1056_p8 = pneg %p1221_p6 }
  0x10   : > { %p1057_p9 = pnand %p1056_p8, %p1055_p7 }
  0x12   : > { %p1058_p10 = pneg %p1057_p9 }
  0x14   : > { %p1063_p12 = pnand %p1061_p11, %p1058_p10 }
  0x16   : > { %1066 = shalt.err (!%p1063_p12)
}
  0x17   : > { %s1067_s20 = scalar_lea.vmem %s247_s9, 512  ;;  %p1075_p2 = scmp.lt.s32.totalorder %s247_s9, %s247_s9 }
  0x18   : > { %p1068_p13 = scmp.ne.s32.totalorder %s247_s9, %s1067_s20  ;;  %p1076_p5 = scmp.lt.s32.totalorder %s1067_s20, %s1067_s20 }
  0x1a   : > { %p1070_p0 = pnand %p1068_p13, %p1056_p8  ;;  %p1077_p4 = por %p1076_p5, %p1075_p2 }
  0x1c   : > { %p1071_p1 = pneg %p1070_p0 }
  0x1e   : > { %p1078_p3 = pnand %p1077_p4, %p1071_p1 }
  0x20   : > { %1081 = shalt.err (!%p1078_p3)
}
  0x21   : > { %s1144_s21 = smov 128   ;;  %s1145_s22 = smov 8  }
  0x22   : > { %997 = dma.hbm_to_vmem [thread:$0]  (!%p1221_p6), %s1354_s1, 512, %s247_s9, [#allocation3], %s1144_s21, %s1144_s21, %s1145_s22  }
  0x23   : > { %s1082_s13 = scalar_lea.hbm %s1357_s4, 1024 }
  0x24   : > { %p1083_p7 = scmp.ne.s32.totalorder %s1357_s4, %s1082_s13  ;;  %p1089_p9 = scmp.lt.u32.totalorder %s1082_s13, %s1357_s4 }
  0x26   : > { %p1085_p3 = pnand %p1083_p7, %p1056_p8 }
  0x28   : > { %p1086_p4 = pneg %p1085_p3 }
  0x2a   : > { %p1091_p10 = pnand %p1089_p9, %p1086_p4 }
  0x2c   : > { %1094 = shalt.err (!%p1091_p10)
}
  0x2d   : > { %s1095_s9 = scalar_lea.vmem %s1225_s12, 1024  ;;  %p1103_p0 = scmp.lt.s32.totalorder %s1225_s12, %s1225_s12 }
  0x2e   : > { %p1096_p11 = scmp.ne.s32.totalorder %s1225_s12, %s1095_s9  ;;  %p1104_p1 = scmp.lt.s32.totalorder %s1095_s9, %s1095_s9 }
  0x30   : > { %p1098_p12 = pnand %p1096_p11, %p1056_p8  ;;  %p1105_p2 = por %p1104_p1, %p1103_p0 }
  0x32   : > { %p1099_p13 = pneg %p1098_p12 }
  0x34   : > { %p1106_p5 = pnand %p1105_p2, %p1099_p13 }
  0x36   : > { %1109 = shalt.err (!%p1106_p5)
}
  0x37   : > { %s1146_s18 = smov 64   ;;  %s1147_s19 = smov 4  }
  0x38   : > { %1000 = dma.hbm_to_vmem [thread:$0]  (!%p1221_p6), %s1357_s4, 1024, %s1225_s12, [#allocation5], %s1146_s18, %s1146_s18, %s1147_s19  }
  0x39   : > { %p1367_p7 = scmp.ne.s32.totalorder %s1364_s29, 0 }
  0x3a   : > { %p1368_p8 = scmp.ne.s32.totalorder (!%p1367_p7), %s1365_s30, 0 }
  0x3b   : > { %297 = sbr.rel (%p1367_p7) target bundleno = 323 (0x143), region = 44 }
  0x42   : > { %1123 = dma.done.wait (%p1368_p8), [#allocation3], 512  }
  0x43   : > { %1125 = vsyncadd (%p1368_p8), [#allocation3], 4294966784 }
  0x44   : > { %1127 = dma.done.wait (%p1368_p8), [#allocation5], 1024  }
  0x45   : > { %1129 = vsyncadd (%p1368_p8), [#allocation5], 4294966272  ;;  %v1035_v0 = vld [vmem:[%s1355_s2] sm:$0xff]   ;;  %v1037_v2 = vld [vmem:[%s1355_s2 + $0x8] sm:$0xff]   ;;  %p351_p6 = scmp.lt.s32.totalorder %s1132_s24, 1  ;;  %vm671_vm0 = vcmask 1040384  }
  0x46   : > { %v1036_v1 = vld [vmem:[#allocation4] sm:$0xff]   ;;  %946 = vmatprep.subr.bf16.mxu0 %v1035_v0  ;;  %v1038_v3 = vld [vmem:[#allocation4 + $0x8] sm:$0xff]   ;;  %v1039_v4 = vld [vmem:[%s1355_s2 + $0x10] sm:$0xff]   ;;  %vm672_vm1 = vsmask.f32 256 }
  0x47   : > { %966 = vmatprep.subr.bf16.mxu1 %v1036_v1  ;;  %947 = vmatpush3.bf16.msra.mxu0 %v1035_v0  ;;  %v1040_v5 = vld [vmem:[#allocation4 + $0x10] sm:$0xff]   ;;  %s1376_s24 = smov (!%p351_p6, %s1132_s24), 1  ;;  %v1041_v6 = vld [vmem:[%s1355_s2 + $0x18] sm:$0xff]   ;;  %v1043_v8 = vld [vmem:[%s1355_s2 + $0x20] sm:$0xff]  }
  0x48   : > { %967 = vmatpush3.bf16.msra.mxu1 %v1036_v1  ;;  %948 = vmatprep.subr.bf16.mxu0 %v1037_v2  ;;  %v1042_v7 = vld [vmem:[#allocation4 + $0x18] sm:$0xff]   ;;  %s1298_s11 = sshll.u32 %s1376_s24, 4  ;;  %v1044_v9 = vld [vmem:[#allocation4 + $0x20] sm:$0xff]   ;;  %v1045_v10 = vld [vmem:[%s1355_s2 + $0x28] sm:$0xff]  }
  0x49   : > { %968 = vmatprep.subr.bf16.mxu1 %v1038_v3  ;;  %s358_s17 = scalar_lea.vmem %s1353_s0, %s1298_s11  ;;  %v390_v12 = vld [vmem:[#allocation2] sm:$0xff]  ;;  %v391_v13 = vld [vmem:[#allocation2 + $0x8] sm:$0xff]  ;;  %v1047_v21 = vld [vmem:[%s1355_s2 + $0x30] sm:$0xff]   ;;  %s1326_s27 = scalar_lea.vmem %s1359_s6, %s1298_s11 }
  0x4a   : > { %v382_v11 = vld [vmem:[%s358_s17] sm:$0xff]   ;;  %v1046_v14 = vld [vmem:[#allocation4 + $0x28] sm:$0xff]   ;;  %v1048_v22 = vld [vmem:[#allocation4 + $0x30] sm:$0xff]   ;;  %s379_s14 = scalar_lea.vmem %s1360_s7, %s1298_s11 }
  0x4b   : > { %949 = vmatpush3.bf16.msra.mxu0 %v1037_v2  ;;  %v386_v15 = vunpack.c.l.bf16 %v382_v11  ;;  %v387_v16 = vunpack.c.h.bf16 %v382_v11  ;;  %982 = vmatprep.mubr.bf16.mxu1 %v382_v11  ;;  %v384_v19 = vld [vmem:[%s358_s17 + $0x8] sm:$0xf]  ;;  %v385_v20 = vld [vmem:[%s358_s17 + $0xc] sm:$0x1]  ;;  %v392_v26 = vld [vmem:[#allocation2 + $0x10] sm:$0xff] }
  0x4c   : > { %969 = vmatpush3.bf16.msra.mxu1 %v1038_v3  ;;  %950 = vmatprep.subr.bf16.mxu0 %v1039_v4  ;;  %v388_v24 = vunpack.c.l.bf16 %v384_v19  ;;  %v389_v25 = vunpack.c.l.bf16 %v385_v20  ;;  %v393_v27 = vld [vmem:[#allocation2 + $0x18] sm:$0x1]  ;;  %v886_v33 = vcombine.low %v384_v19, %v385_v20  ;;  %v875_v34 = vld [vmem:[%s1356_s3] ss:$0 sm:$0xff]  ;;  %vm1332_vm2 = vmand %vm671_vm0, %vm672_vm1 }
  0x4d   : > { %970 = vmatprep.subr.bf16.mxu1 %v1040_v5  ;;  %v394_v17 = vadd.f32 %v390_v12, %v386_v15  ;;  %v395_v18 = vadd.f32 %v391_v13, %v387_v16  ;;  %v1049_v28 = vld [vmem:[%s1355_s2 + $0x38] sm:$0xff]   ;;  %v884_v35 = vld [vmem:[%s1358_s5] ss:$0 sm:$0xff]  ;;  %v674_v50 = vld [vmem:[%s1326_s27 + $0xc] sm:$0x1] }
  0x4e   : > { %v1050_v29 = vld [vmem:[#allocation4 + $0x38] sm:$0xff]   ;;  %v396_v30 = vadd.f32 %v392_v26, %v388_v24  ;;  %v397_v31 = vadd.f32 %v393_v27, %v389_v25  ;;  %v696_v56 = vld [vmem:[%s379_s14 + $0xc] sm:$0x1] }
  0x4f   : > { %951 = vmatpush3.bf16.msra.mxu0 %v1039_v4  ;;  %v398_v23 = vpack.c.bf16 %v395_v18, %v394_v17 }
  0x50   : > { %971 = vmatpush3.bf16.msra.mxu1 %v1040_v5  ;;  %952 = vmatprep.subr.bf16.mxu0 %v1041_v6  ;;  %v399_v32 = vpack.c.bf16 %v397_v31, %v396_v30 }
  0x51   : > { %972 = vmatprep.subr.bf16.mxu1 %v1042_v7  ;;  %962 = vmatprep.mubr.bf16.mxu0 %v398_v23 }
  0x53   : > { %953 = vmatpush3.bf16.msra.mxu0 %v1041_v6 }
  0x54   : > { %973 = vmatpush3.bf16.msra.mxu1 %v1042_v7  ;;  %954 = vmatprep.subr.bf16.mxu0 %v1043_v8 }
  0x55   : > { %974 = vmatprep.subr.bf16.mxu1 %v1044_v9 }
  0x57   : > { %955 = vmatpush3.bf16.msra.mxu0 %v1043_v8 }
  0x58   : > { %975 = vmatpush3.bf16.msra.mxu1 %v1044_v9  ;;  %956 = vmatprep.subr.bf16.mxu0 %v1045_v10 }
  0x59   : > { %976 = vmatprep.subr.bf16.mxu1 %v1046_v14 }
  0x5b   : > { %957 = vmatpush3.bf16.msra.mxu0 %v1045_v10 }
  0x5c   : > { %977 = vmatpush3.bf16.msra.mxu1 %v1046_v14  ;;  %958 = vmatprep.subr.bf16.mxu0 %v1047_v21 }
  0x5d   : > { %978 = vmatprep.subr.bf16.mxu1 %v1048_v22 }
  0x5f   : > { %959 = vmatpush3.bf16.msra.mxu0 %v1047_v21 }
  0x60   : > { %979 = vmatpush3.bf16.msra.mxu1 %v1048_v22  ;;  %960 = vmatprep.subr.bf16.mxu0 %v1049_v28 }
  0x61   : > { %980 = vmatprep.subr.bf16.mxu1 %v1050_v29 }
  0x63   : > { %961 = vmatpush3.bf16.msra.mxu0 %v1049_v28 }
  0x64   : > { %981 = vmatpush3.bf16.msra.mxu1 %v1050_v29 }
  0x66   : > { %963 = vmatmul.mubr.bf16.vlgmr.msra.gmra.mrb[0].mxu0 %v399_v32 }
  0x67   : > { %983 = vmatmul.mubr.bf16.vlgmr.msra.gmra.mrb[0].mxu1 %v886_v33 }
 0x139   : > { %v964_v36 = vpop.f32.mrb[0].mxu0 }
 0x13a   : > { %v514_v37 = vadd.f32 %v964_v36, %v875_v34  ;;  %v984_v38 = vpop.f32.mrb[0].mxu1  ;;  %v505_v39 = vpop.f32.mrb[1].mxu0 }
 0x13b   : > { %v646_v40 = vadd.f32 %v984_v38, %v884_v35  ;;  %v637_v41 = vpop.f32.mrb[1].mxu1  ;;  %v965_v42 = vpop.f32.mrb[2].mxu0  ;;  %v506_v48 = vadd.f32 %v875_v34, %v505_v39 }
 0x13c   : > { %v910_v43 = vpack.c.bf16 %v514_v37, %v514_v37  ;;  %v517_v44 = vadd.f32 %v965_v42, %v875_v34  ;;  %v985_v45 = vpop.f32.mrb[2].mxu1  ;;  %v508_v46 = vpop.f32.mrb[3].mxu0  ;;  %v638_v54 = vadd.f32 %v884_v35, %v637_v41 }
 0x13d   : > { %v914_v47 = vpack.c.bf16 %v646_v40, %v646_v40  ;;  %v649_v51 = vadd.f32 %v985_v45, %v884_v35  ;;  %v509_v52 = vadd.f32 %v875_v34, %v508_v46  ;;  %v640_v53 = vpop.f32.mrb[3].mxu1 }
 0x13e   : > { %670 = vst [vmem:[%s1326_s27 + $0x8] sm:$0xf] %v910_v43  ;;  %v911_v55 = vpack.c.bf16 %v517_v44, %v517_v44  ;;  %v641_v57 = vadd.f32 %v884_v35, %v640_v53 }
 0x13f   : > { %695 = vst [vmem:[%s379_s14 + $0x8] sm:$0xf] %v914_v47  ;;  %v915_v58 = vpack.c.bf16 %v649_v51, %v649_v51  ;;  %v919_v59 = vpack.c.bf16 %v509_v52, %v506_v48 }
 0x140   : > { %v675_v60 = vsel %vm1332_vm2, %v911_v55, %v674_v50  ;;  %v924_v61 = vpack.c.bf16 %v641_v57, %v638_v54 }
 0x141   : > { %676 = vst [vmem:[%s1326_s27 + $0xc] sm:$0x1] %v675_v60  ;;  %v697_v62 = vsel %vm1332_vm2, %v915_v58, %v696_v56  ;;  %920 = vst [vmem:[%s1326_s27] sm:$0xff] %v919_v59  }
 0x142   : > { %698 = vst [vmem:[%s379_s14 + $0xc] sm:$0x1] %v697_v62  ;;  %925 = vst [vmem:[%s379_s14] sm:$0xff] %v924_v61  }
 0x143 PF: > { %s20_s26 = sadd.s32 1, %s1140_s26   ;;  %s1371_s24 = smov %s1136_s25 }
 0x144   : > { %p17_p3 = scmp.ge.s32.totalorder %s20_s26, 4   ;;  %s1372_s25 = smov %s1374_s28 }
 0x146   :  { %19 = sbr.rel (!%p17_p3) target bundleno = 3 (0x3), region = 96 }
 0x14d   :  { %754 = vsyncpa [#allocation3], 1 }
 0x14e   :  { %756 = vsyncpa [#allocation3 + $0x1], 1 }
 0x14f   :  { %757 = vsyncpa [#allocation5], 1 }

</bundles_post_ra>
